<compile_context>
chip_gen: v7x
topology: tpu7x:2x2x1
jax: 0.10.0
libtpu: 0.0.40
codegen_flags: <defaults>
</compile_context>

<pallas_src>
import jax
import jax.numpy as jnp
from jax.experimental import pallas as pl
from jax.experimental.pallas import tpu as pltpu


# ------------------------------ tiling helper ------------------------------
def _choose_tile_n(n, row_bytes):
    """Pick a lane-dense tile of the point axis that fits comfortably in VMEM."""
    if n % 128 != 0:
        return n  # block == full dim is always legal
    budget = 12 * 1024 * 1024  # leave headroom for double-buffering under default scoped VMEM
    for t in (2048, 1024, 512, 256, 128):
        if n % t == 0 and t * row_bytes <= budget:
            return t
    return 128


# ------------------------------ fused kernel -------------------------------
def _make_fused_kernel(num_layers, use_pts1, learned, s_is_one):
    """Builds the fused interp + (concat) + MLP kernel for a fixed arg structure.

    Ref order: xyz1 [1,3,TN], xyz2 [1,S,3], (pts1 [1,D1,TN] if use_pts1),
               pts2 [1,D2,S], then per-layer folded weights/shifts, then out.
    """

    def kernel(*refs):
        idx = 0
        xyz1_ref = refs[idx]; idx += 1
        xyz2_ref = refs[idx]; idx += 1
        pts1_ref = None
        if use_pts1:
            pts1_ref = refs[idx]; idx += 1
        pts2_ref = refs[idx]; idx += 1
        w_refs = refs[idx:-1]
        out_ref = refs[-1]

        tn = xyz1_ref.shape[2]
        pts2 = pts2_ref[0].astype(jnp.float32)            # [D2, S]
        d2 = pts2.shape[0]

        # ---------------- 3-NN inverse-distance interpolation ----------------
        if s_is_one:
            # S == 1: broadcast the single center's features to every point.
            interp = jnp.broadcast_to(pts2, (d2, tn))
        else:
            x1 = xyz1_ref[0].astype(jnp.float32)          # [3, TN] (channels-first)
            x2 = xyz2_ref[0].astype(jnp.float32)          # [S, 3]
            s = x2.shape[0]

            # Squared distances d[s, n] via VPU broadcasts (exactly >= 0, no
            # cancellation issues of the expanded -2xy + |x|^2 + |y|^2 form).
            d = jnp.zeros((s, tn), jnp.float32)
            for c in range(3):
                diff = x2[:, c:c + 1] - x1[c:c + 1, :]    # [S,1] - [1,TN] -> [S,TN]
                d = d + diff * diff

            # 3 nearest neighbours (static unroll), tie-break = smallest index.
            # TODO(synk): assumes S >= 3 (matches the module's intended usage); for
            # 1 < S < 3 the phantom neighbour gets weight 1/inf ~ 0.
            iota_s = jax.lax.broadcasted_iota(jnp.int32, (s, tn), 0)
            wmat = jnp.zeros((s, tn), jnp.float32)        # sparse weight matrix [S, TN]
            dcur = d
            for _ in range(3):
                mval = jnp.min(dcur, axis=0, keepdims=True)                  # [1, TN]
                is_min = dcur == mval
                sel_idx = jnp.min(jnp.where(is_min, iota_s, s), axis=0, keepdims=True)
                sel = iota_s == sel_idx                                      # one-hot
                recip = 1.0 / (mval + 1e-8)
                wmat = wmat + jnp.where(sel, recip, 0.0)
                dcur = jnp.where(sel, jnp.float32(jnp.inf), dcur)

            inv_norm = 1.0 / jnp.sum(wmat, axis=0, keepdims=True)            # [1, TN]
            wmat = wmat * inv_norm
            # interpolated_points (channels-first): [D2, S] @ [S, TN] -> [D2, TN]
            interp = jnp.dot(pts2, wmat, preferred_element_type=jnp.float32)

        # ----------------------------- MLP head ------------------------------
        if learned:
            if use_pts1:
                # concat([points1, interp]) folded into a split first-layer matmul.
                pts1 = pts1_ref[0].astype(jnp.float32)    # [D1, TN]
                w0a = w_refs[0][...].astype(jnp.float32)  # [C0, D1]
                w0b = w_refs[1][...].astype(jnp.float32)  # [C0, D2]
                sh0 = w_refs[2][...].astype(jnp.float32)  # [C0, 1]
                x = (jnp.dot(w0a, pts1, preferred_element_type=jnp.float32)
                     + jnp.dot(w0b, interp, preferred_element_type=jnp.float32)
                     + sh0)
                base = 3
            else:
                w0 = w_refs[0][...].astype(jnp.float32)
                sh0 = w_refs[1][...].astype(jnp.float32)
                x = jnp.dot(w0, interp, preferred_element_type=jnp.float32) + sh0
                base = 2
            x = jnp.maximum(x, 0.0)
            for l in range(1, num_layers):
                wl = w_refs[base + 2 * (l - 1)][...].astype(jnp.float32)
                shl = w_refs[base + 2 * (l - 1) + 1][...].astype(jnp.float32)
                x = jnp.maximum(jnp.dot(wl, x, preferred_element_type=jnp.float32) + shl, 0.0)
            out_ref[0] = x.astype(out_ref.dtype)
        else:
            out_ref[0] = interp.astype(out_ref.dtype)

    return kernel


# ------------------------------ module wrapper ------------------------------
class PointNetFeaturePropagationPallas:
    def __init__(self, in_channel, mlp, key):
        self.layers = []
        last = in_channel
        for out_channel in mlp:
            key, k1, k2, k3, k4, k5 = jax.random.split(key, 6)
            w = 0.1 * jax.random.normal(k1, (out_channel, last), jnp.float32)   # Conv1d weight (k=1)
            b = 0.1 * jax.random.normal(k2, (out_channel,), jnp.float32)        # Conv1d bias
            gamma = 1.0 + 0.1 * jax.random.normal(k3, (out_channel,), jnp.float32)
            beta = 0.1 * jax.random.normal(k4, (out_channel,), jnp.float32)
            mean = 0.1 * jax.random.normal(k5, (out_channel,), jnp.float32)
            var = jnp.ones((out_channel,), jnp.float32)
            self.layers.append((w, b, gamma, beta, mean, var))
            last = out_channel

    def _folded_params(self, eps=1e-5):
        # TODO(synk): BatchNorm1d folded in eval mode (running stats); training-mode
        # batch statistics would need a cross-batch reduction pass.
        folded = []
        for (w, b, gamma, beta, mean, var) in self.layers:
            scale = gamma / jnp.sqrt(var + eps)
            folded.append((w * scale[:, None], ((b - mean) * scale + beta)[:, None]))
        return folded

    def __call__(self, xyz1, xyz2, points1, points2, is_learned=True, use_ori_pc=True):
        # PyTorch layouts: xyz1 [B,3,N], xyz2 [B,3,S], points1 [B,D1,N] | None, points2 [B,D2,S]
        B, _, N = xyz1.shape
        S = xyz2.shape[2]
        D2 = points2.shape[1]
        use_pts1 = (points1 is not None) and use_ori_pc
        D1 = points1.shape[1] if use_pts1 else 0
        learned = bool(is_learned) and len(self.layers) > 0

        xyz2_sc = jnp.transpose(xyz2, (0, 2, 1))          # [B, S, 3]  (tiny tensor)

        chan_sum = 3 + D1 + D2 + S
        if learned:
            chan_sum += sum(w.shape[0] for (w, *_r) in self.layers)
        TN = _choose_tile_n(N, 4 * chan_sum)
        grid = (B, N // TN)

        in_specs = [
            pl.BlockSpec((1, 3, TN), lambda b, t: (b, 0, t)),   # xyz1 (channels-first)
            pl.BlockSpec((1, S, 3), lambda b, t: (b, 0, 0)),    # xyz2 (per-batch resident)
        ]
        args = [xyz1, xyz2_sc]
        if learned and use_pts1:
            in_specs.append(pl.BlockSpec((1, D1, TN), lambda b, t: (b, 0, t)))
            args.append(points1)
        in_specs.append(pl.BlockSpec((1, D2, S), lambda b, t: (b, 0, 0)))
        args.append(points2)

        if learned:
            folded = self._folded_params()
            w0, s0 = folded[0]
            if use_pts1:
                w_args = [w0[:, :D1], w0[:, D1:], s0]           # split first layer (== concat)
            else:
                w_args = [w0, s0]
            for wl, sl in folded[1:]:
                w_args += [wl, sl]
            for a in w_args:
                in_specs.append(pl.BlockSpec(a.shape, lambda b, t: (0, 0)))  # resident in VMEM
            args += w_args
            c_out = self.layers[-1][0].shape[0]
        else:
            c_out = D2

        kernel = _make_fused_kernel(len(self.layers) if learned else 0,
                                    learned and use_pts1, learned, S == 1)

        out = pl.pallas_call(
            kernel,
            out_shape=jax.ShapeDtypeStruct((B, c_out, N), jnp.float32),
            grid=grid,
            in_specs=in_specs,
            out_specs=pl.BlockSpec((1, c_out, TN), lambda b, t: (b, 0, t)),
            compiler_params=pltpu.CompilerParams(
                dimension_semantics=("parallel", "parallel")),
        )(*args)

        if not learned and use_pts1:
            # is_learned=False path: features are just concatenated (rare path).
            out = jnp.concatenate([points1.astype(out.dtype), out], axis=1)
        return out                                           # [B, C', N]


# ----------------------------- reference (pure JAX) --------------------------
def _reference(module, xyz1, xyz2, points1, points2):
    hp = jax.lax.Precision.HIGHEST
    x1 = jnp.transpose(xyz1, (0, 2, 1)).astype(jnp.float32)
    x2 = jnp.transpose(xyz2, (0, 2, 1)).astype(jnp.float32)
    p2 = jnp.transpose(points2, (0, 2, 1)).astype(jnp.float32)
    d = (-2.0 * jnp.einsum('bnc,bmc->bnm', x1, x2, precision=hp)
         + jnp.sum(x1 ** 2, -1)[:, :, None] + jnp.sum(x2 ** 2, -1)[:, None, :])
    idx = jnp.argsort(d, axis=-1)[:, :, :3]
    dists = jnp.take_along_axis(d, idx, axis=-1)
    recip = 1.0 / (dists + 1e-8)
    weight = recip / jnp.sum(recip, axis=-1, keepdims=True)
    gathered = jnp.take_along_axis(p2[:, None, :, :],
                                   idx[:, :, :, None], axis=2)            # [B,N,3,D2]
    interp = jnp.sum(gathered * weight[..., None], axis=2)
    p1 = jnp.transpose(points1, (0, 2, 1)).astype(jnp.float32)
    x = jnp.concatenate([p1, interp], axis=-1)
    for (w, b, gamma, beta, mean, var) in module.layers:
        y = jnp.einsum('bnc,oc->bno', x, w, precision=hp) + b
        y = (y - mean) / jnp.sqrt(var + 1e-5) * gamma + beta
        x = jnp.maximum(y, 0.0)
    return jnp.transpose(x, (0, 2, 1))


if __name__ == "__main__":
    key = jax.random.PRNGKey(0)
    B, N, S, D1, D2 = 2, 32, 16, 3, 8
    mlp = [32, 16]
    in_channel = D1 + D2

    k1, k2, k3, k4, kp = jax.random.split(key, 5)
    xyz1 = jax.random.normal(k1, (B, 3, N), jnp.float32)       # original pc positions
    xyz2 = jax.random.normal(k2, (B, 3, S), jnp.float32)       # sampled centers
    points1 = jax.random.normal(k3, (B, D1, N), jnp.float32)   # original pc features
    points2 = jax.random.normal(k4, (B, D2, S), jnp.float32)   # center features

    module = PointNetFeaturePropagationPallas(in_channel, mlp, kp)

    out = jax.block_until_ready(module(xyz1, xyz2, points1, points2))
    assert out.shape == (B, mlp[-1], N), out.shape

    ref = _reference(module, xyz1, xyz2, points1, points2)
    err = float(jnp.max(jnp.abs(out - ref)))
    assert jnp.allclose(out, ref, rtol=1e-3, atol=1e-3), err

    print("KERNEL_OK")
</pallas_src>

<mosaic_0001>
module attributes {stable_mosaic.version = 11 : i64} {
  func.func @kernel(%arg0: i32, %arg1: i32, %arg2: memref<1x3x32xf32, #tpu.memory_space<vmem>>, %arg3: memref<1x16x3xf32, #tpu.memory_space<vmem>>, %arg4: memref<1x3x32xf32, #tpu.memory_space<vmem>>, %arg5: memref<1x8x16xf32, #tpu.memory_space<vmem>>, %arg6: memref<32x3xf32, #tpu.memory_space<vmem>>, %arg7: memref<32x8xf32, #tpu.memory_space<vmem>>, %arg8: memref<32x1xf32, #tpu.memory_space<vmem>>, %arg9: memref<16x32xf32, #tpu.memory_space<vmem>>, %arg10: memref<16x1xf32, #tpu.memory_space<vmem>>, %arg11: memref<1x16x32xf32, #tpu.memory_space<vmem>>) attributes {dimension_semantics = [#tpu.dimension_semantics<parallel>, #tpu.dimension_semantics<parallel>], iteration_bounds = array<i64: 2, 1>, scalar_prefetch = 0 : i64, scratch_operands = 0 : i64, tpu.core_type = #tpu.core_type<tc>, window_params = [{transform_indices = @transform_0, window_bounds = array<i64: 1, 3, 32>}, {transform_indices = @transform_1, window_bounds = array<i64: 1, 16, 3>}, {transform_indices = @transform_2, window_bounds = array<i64: 1, 3, 32>}, {transform_indices = @transform_3, window_bounds = array<i64: 1, 8, 16>}, {pipeline_mode = #tpu.pipeline_mode<synchronous>, transform_indices = @transform_4, window_bounds = array<i64: 32, 3>}, {pipeline_mode = #tpu.pipeline_mode<synchronous>, transform_indices = @transform_5, window_bounds = array<i64: 32, 8>}, {pipeline_mode = #tpu.pipeline_mode<synchronous>, transform_indices = @transform_6, window_bounds = array<i64: 32, 1>}, {pipeline_mode = #tpu.pipeline_mode<synchronous>, transform_indices = @transform_7, window_bounds = array<i64: 16, 32>}, {pipeline_mode = #tpu.pipeline_mode<synchronous>, transform_indices = @transform_8, window_bounds = array<i64: 16, 1>}, {transform_indices = @transform_9, window_bounds = array<i64: 1, 16, 32>}]} {
    %c0 = arith.constant 0 : index
    %c0_0 = arith.constant 0 : index
    %c0_1 = arith.constant 0 : index
    %0 = vector.load %arg5[%c0, %c0_0, %c0_1] : memref<1x8x16xf32, #tpu.memory_space<vmem>>, vector<1x8x16xf32>
    %1 = vector.shape_cast %0 : vector<1x8x16xf32> to vector<8x16xf32>
    %c0_2 = arith.constant 0 : index
    %c0_3 = arith.constant 0 : index
    %c0_4 = arith.constant 0 : index
    %2 = vector.load %arg2[%c0_2, %c0_3, %c0_4] : memref<1x3x32xf32, #tpu.memory_space<vmem>>, vector<1x3x32xf32>
    %3 = vector.shape_cast %2 : vector<1x3x32xf32> to vector<3x32xf32>
    %c0_5 = arith.constant 0 : index
    %c0_6 = arith.constant 0 : index
    %c0_7 = arith.constant 0 : index
    %4 = vector.load %arg3[%c0_5, %c0_6, %c0_7] : memref<1x16x3xf32, #tpu.memory_space<vmem>>, vector<1x16x3xf32>
    %5 = vector.shape_cast %4 : vector<1x16x3xf32> to vector<16x3xf32>
    %cst = arith.constant 0.000000e+00 : f32
    %6 = vector.broadcast %cst : f32 to vector<16x32xf32>
    %7 = vector.extract_strided_slice %5 {offsets = [0, 0], sizes = [16, 1], strides = [1, 1]} : vector<16x3xf32> to vector<16x1xf32>
    %8 = vector.extract_strided_slice %3 {offsets = [0, 0], sizes = [1, 32], strides = [1, 1]} : vector<3x32xf32> to vector<1x32xf32>
    %9 = vector.broadcast %7 : vector<16x1xf32> to vector<16x32xf32>
    %10 = vector.broadcast %8 : vector<1x32xf32> to vector<16x32xf32>
    %11 = arith.subf %9, %10 : vector<16x32xf32>
    %12 = arith.mulf %11, %11 : vector<16x32xf32>
    %13 = arith.addf %6, %12 : vector<16x32xf32>
    %14 = vector.extract_strided_slice %5 {offsets = [0, 1], sizes = [16, 1], strides = [1, 1]} : vector<16x3xf32> to vector<16x1xf32>
    %15 = vector.extract_strided_slice %3 {offsets = [1, 0], sizes = [1, 32], strides = [1, 1]} : vector<3x32xf32> to vector<1x32xf32>
    %16 = vector.broadcast %14 : vector<16x1xf32> to vector<16x32xf32>
    %17 = vector.broadcast %15 : vector<1x32xf32> to vector<16x32xf32>
    %18 = arith.subf %16, %17 : vector<16x32xf32>
    %19 = arith.mulf %18, %18 : vector<16x32xf32>
    %20 = arith.addf %13, %19 : vector<16x32xf32>
    %21 = vector.extract_strided_slice %5 {offsets = [0, 2], sizes = [16, 1], strides = [1, 1]} : vector<16x3xf32> to vector<16x1xf32>
    %22 = vector.extract_strided_slice %3 {offsets = [2, 0], sizes = [1, 32], strides = [1, 1]} : vector<3x32xf32> to vector<1x32xf32>
    %23 = vector.broadcast %21 : vector<16x1xf32> to vector<16x32xf32>
    %24 = vector.broadcast %22 : vector<1x32xf32> to vector<16x32xf32>
    %25 = arith.subf %23, %24 : vector<16x32xf32>
    %26 = arith.mulf %25, %25 : vector<16x32xf32>
    %27 = arith.addf %20, %26 : vector<16x32xf32>
    %28 = tpu.iota {dimensions = array<i32: 0>} : vector<16x32xi32>
    %cst_8 = arith.constant 0.000000e+00 : f32
    %29 = vector.broadcast %cst_8 : f32 to vector<16x32xf32>
    %cst_9 = arith.constant dense<0x7F800000> : vector<32xf32>
    %30 = vector.multi_reduction <minimumf>, %27, %cst_9 [0] : vector<16x32xf32> to vector<32xf32>
    %31 = vector.shape_cast %30 : vector<32xf32> to vector<1x32xf32>
    %32 = vector.broadcast %31 : vector<1x32xf32> to vector<16x32xf32>
    %33 = arith.cmpf oeq, %27, %32 : vector<16x32xf32>
    %c16_i32 = arith.constant 16 : i32
    %34 = vector.broadcast %c16_i32 : i32 to vector<16x32xi32>
    %35 = arith.select %33, %28, %34 : vector<16x32xi1>, vector<16x32xi32>
    %cst_10 = arith.constant dense<2147483647> : vector<32xi32>
    %36 = vector.multi_reduction <minsi>, %35, %cst_10 [0] : vector<16x32xi32> to vector<32xi32>
    %37 = vector.shape_cast %36 : vector<32xi32> to vector<1x32xi32>
    %38 = vector.broadcast %37 : vector<1x32xi32> to vector<16x32xi32>
    %39 = arith.cmpi eq, %28, %38 : vector<16x32xi32>
    %cst_11 = arith.constant 9.99999993E-9 : f32
    %40 = vector.broadcast %cst_11 : f32 to vector<1x32xf32>
    %41 = arith.addf %31, %40 : vector<1x32xf32>
    %cst_12 = arith.constant 1.000000e+00 : f32
    %42 = vector.broadcast %cst_12 : f32 to vector<1x32xf32>
    %43 = arith.divf %42, %41 : vector<1x32xf32>
    %cst_13 = arith.constant 0.000000e+00 : f32
    %44 = vector.shape_cast %43 : vector<1x32xf32> to vector<1x32xf32>
    %45 = vector.broadcast %44 : vector<1x32xf32> to vector<16x32xf32>
    %46 = vector.broadcast %cst_13 : f32 to vector<16x32xf32>
    %47 = arith.select %39, %45, %46 : vector<16x32xi1>, vector<16x32xf32>
    %48 = arith.addf %29, %47 : vector<16x32xf32>
    %cst_14 = arith.constant 0x7F800000 : f32
    %49 = vector.broadcast %cst_14 : f32 to vector<16x32xf32>
    %50 = arith.select %39, %49, %27 : vector<16x32xi1>, vector<16x32xf32>
    %cst_15 = arith.constant dense<0x7F800000> : vector<32xf32>
    %51 = vector.multi_reduction <minimumf>, %50, %cst_15 [0] : vector<16x32xf32> to vector<32xf32>
    %52 = vector.shape_cast %51 : vector<32xf32> to vector<1x32xf32>
    %53 = vector.broadcast %52 : vector<1x32xf32> to vector<16x32xf32>
    %54 = arith.cmpf oeq, %50, %53 : vector<16x32xf32>
    %c16_i32_16 = arith.constant 16 : i32
    %55 = vector.broadcast %c16_i32_16 : i32 to vector<16x32xi32>
    %56 = arith.select %54, %28, %55 : vector<16x32xi1>, vector<16x32xi32>
    %cst_17 = arith.constant dense<2147483647> : vector<32xi32>
    %57 = vector.multi_reduction <minsi>, %56, %cst_17 [0] : vector<16x32xi32> to vector<32xi32>
    %58 = vector.shape_cast %57 : vector<32xi32> to vector<1x32xi32>
    %59 = vector.broadcast %58 : vector<1x32xi32> to vector<16x32xi32>
    %60 = arith.cmpi eq, %28, %59 : vector<16x32xi32>
    %cst_18 = arith.constant 9.99999993E-9 : f32
    %61 = vector.broadcast %cst_18 : f32 to vector<1x32xf32>
    %62 = arith.addf %52, %61 : vector<1x32xf32>
    %cst_19 = arith.constant 1.000000e+00 : f32
    %63 = vector.broadcast %cst_19 : f32 to vector<1x32xf32>
    %64 = arith.divf %63, %62 : vector<1x32xf32>
    %cst_20 = arith.constant 0.000000e+00 : f32
    %65 = vector.shape_cast %64 : vector<1x32xf32> to vector<1x32xf32>
    %66 = vector.broadcast %65 : vector<1x32xf32> to vector<16x32xf32>
    %67 = vector.broadcast %cst_20 : f32 to vector<16x32xf32>
    %68 = arith.select %60, %66, %67 : vector<16x32xi1>, vector<16x32xf32>
    %69 = arith.addf %48, %68 : vector<16x32xf32>
    %cst_21 = arith.constant 0x7F800000 : f32
    %70 = vector.broadcast %cst_21 : f32 to vector<16x32xf32>
    %71 = arith.select %60, %70, %50 : vector<16x32xi1>, vector<16x32xf32>
    %cst_22 = arith.constant dense<0x7F800000> : vector<32xf32>
    %72 = vector.multi_reduction <minimumf>, %71, %cst_22 [0] : vector<16x32xf32> to vector<32xf32>
    %73 = vector.shape_cast %72 : vector<32xf32> to vector<1x32xf32>
    %74 = vector.broadcast %73 : vector<1x32xf32> to vector<16x32xf32>
    %75 = arith.cmpf oeq, %71, %74 : vector<16x32xf32>
    %c16_i32_23 = arith.constant 16 : i32
    %76 = vector.broadcast %c16_i32_23 : i32 to vector<16x32xi32>
    %77 = arith.select %75, %28, %76 : vector<16x32xi1>, vector<16x32xi32>
    %cst_24 = arith.constant dense<2147483647> : vector<32xi32>
    %78 = vector.multi_reduction <minsi>, %77, %cst_24 [0] : vector<16x32xi32> to vector<32xi32>
    %79 = vector.shape_cast %78 : vector<32xi32> to vector<1x32xi32>
    %80 = vector.broadcast %79 : vector<1x32xi32> to vector<16x32xi32>
    %81 = arith.cmpi eq, %28, %80 : vector<16x32xi32>
    %cst_25 = arith.constant 9.99999993E-9 : f32
    %82 = vector.broadcast %cst_25 : f32 to vector<1x32xf32>
    %83 = arith.addf %73, %82 : vector<1x32xf32>
    %cst_26 = arith.constant 1.000000e+00 : f32
    %84 = vector.broadcast %cst_26 : f32 to vector<1x32xf32>
    %85 = arith.divf %84, %83 : vector<1x32xf32>
    %cst_27 = arith.constant 0.000000e+00 : f32
    %86 = vector.shape_cast %85 : vector<1x32xf32> to vector<1x32xf32>
    %87 = vector.broadcast %86 : vector<1x32xf32> to vector<16x32xf32>
    %88 = vector.broadcast %cst_27 : f32 to vector<16x32xf32>
    %89 = arith.select %81, %87, %88 : vector<16x32xi1>, vector<16x32xf32>
    %90 = arith.addf %69, %89 : vector<16x32xf32>
    %cst_28 = arith.constant dense<0.000000e+00> : vector<32xf32>
    %91 = vector.multi_reduction <add>, %90, %cst_28 [0] : vector<16x32xf32> to vector<32xf32>
    %92 = vector.shape_cast %91 : vector<32xf32> to vector<1x32xf32>
    %cst_29 = arith.constant 1.000000e+00 : f32
    %93 = vector.broadcast %cst_29 : f32 to vector<1x32xf32>
    %94 = arith.divf %93, %92 : vector<1x32xf32>
    %95 = vector.broadcast %94 : vector<1x32xf32> to vector<16x32xf32>
    %96 = arith.mulf %90, %95 : vector<16x32xf32>
    %cst_30 = arith.constant dense<0.000000e+00> : vector<8x32xf32>
    %97 = tpu.matmul %1, %96, %cst_30 {dimension_numbers = #tpu.dot_dimension_numbers<[1], [0], [0], [1], [0, 0, 1, 1], [], []>} : vector<8x16xf32>, vector<16x32xf32>, vector<8x32xf32> -> vector<8x32xf32>
    %c0_31 = arith.constant 0 : index
    %c0_32 = arith.constant 0 : index
    %c0_33 = arith.constant 0 : index
    %98 = vector.load %arg4[%c0_31, %c0_32, %c0_33] : memref<1x3x32xf32, #tpu.memory_space<vmem>>, vector<1x3x32xf32>
    %99 = vector.shape_cast %98 : vector<1x3x32xf32> to vector<3x32xf32>
    %c0_34 = arith.constant 0 : index
    %c0_35 = arith.constant 0 : index
    %100 = vector.load %arg6[%c0_34, %c0_35] : memref<32x3xf32, #tpu.memory_space<vmem>>, vector<32x3xf32>
    %c0_36 = arith.constant 0 : index
    %c0_37 = arith.constant 0 : index
    %101 = vector.load %arg7[%c0_36, %c0_37] : memref<32x8xf32, #tpu.memory_space<vmem>>, vector<32x8xf32>
    %c0_38 = arith.constant 0 : index
    %c0_39 = arith.constant 0 : index
    %102 = vector.load %arg8[%c0_38, %c0_39] : memref<32x1xf32, #tpu.memory_space<vmem>>, vector<32x1xf32>
    %cst_40 = arith.constant dense<0.000000e+00> : vector<32x32xf32>
    %103 = tpu.matmul %100, %99, %cst_40 {dimension_numbers = #tpu.dot_dimension_numbers<[1], [0], [0], [1], [0, 0, 1, 1], [], []>} : vector<32x3xf32>, vector<3x32xf32>, vector<32x32xf32> -> vector<32x32xf32>
    %cst_41 = arith.constant dense<0.000000e+00> : vector<32x32xf32>
    %104 = tpu.matmul %101, %97, %cst_41 {dimension_numbers = #tpu.dot_dimension_numbers<[1], [0], [0], [1], [0, 0, 1, 1], [], []>} : vector<32x8xf32>, vector<8x32xf32>, vector<32x32xf32> -> vector<32x32xf32>
    %105 = arith.addf %103, %104 : vector<32x32xf32>
    %106 = vector.broadcast %102 : vector<32x1xf32> to vector<32x32xf32>
    %107 = arith.addf %105, %106 : vector<32x32xf32>
    %cst_42 = arith.constant 0.000000e+00 : f32
    %108 = vector.broadcast %cst_42 : f32 to vector<32x32xf32>
    %109 = arith.maximumf %107, %108 : vector<32x32xf32>
    %c0_43 = arith.constant 0 : index
    %c0_44 = arith.constant 0 : index
    %110 = vector.load %arg9[%c0_43, %c0_44] : memref<16x32xf32, #tpu.memory_space<vmem>>, vector<16x32xf32>
    %c0_45 = arith.constant 0 : index
    %c0_46 = arith.constant 0 : index
    %111 = vector.load %arg10[%c0_45, %c0_46] : memref<16x1xf32, #tpu.memory_space<vmem>>, vector<16x1xf32>
    %cst_47 = arith.constant dense<0.000000e+00> : vector<16x32xf32>
    %112 = tpu.matmul %110, %109, %cst_47 {dimension_numbers = #tpu.dot_dimension_numbers<[1], [0], [0], [1], [0, 0, 1, 1], [], []>} : vector<16x32xf32>, vector<32x32xf32>, vector<16x32xf32> -> vector<16x32xf32>
    %113 = vector.broadcast %111 : vector<16x1xf32> to vector<16x32xf32>
    %114 = arith.addf %112, %113 : vector<16x32xf32>
    %cst_48 = arith.constant 0.000000e+00 : f32
    %115 = vector.broadcast %cst_48 : f32 to vector<16x32xf32>
    %116 = arith.maximumf %114, %115 : vector<16x32xf32>
    %c0_49 = arith.constant 0 : index
    %c0_50 = arith.constant 0 : index
    %c0_51 = arith.constant 0 : index
    %117 = vector.load %arg11[%c0_49, %c0_50, %c0_51] : memref<1x16x32xf32, #tpu.memory_space<vmem>>, vector<1x16x32xf32>
    %118 = vector.shape_cast %117 : vector<1x16x32xf32> to vector<16x32xf32>
    %119 = vector.shape_cast %116 : vector<16x32xf32> to vector<1x16x32xf32>
    tpu.vector_store %arg11[%c0_49, %c0_50, %c0_51], %119 {strides = array<i32>} : memref<1x16x32xf32, #tpu.memory_space<vmem>>, vector<1x16x32xf32>,
    return
  }
  func.func @transform_0(%arg0: i32, %arg1: i32) -> (i32, i32, i32) {
    %c0_i32 = arith.constant 0 : i32
    %c0_i32_0 = arith.constant 0 : i32
    return %arg0, %c0_i32, %arg1 : i32, i32, i32
  }
  func.func @transform_1(%arg0: i32, %arg1: i32) -> (i32, i32, i32) {
    %c0_i32 = arith.constant 0 : i32
    %c0_i32_0 = arith.constant 0 : i32
    %c0_i32_1 = arith.constant 0 : i32
    return %arg0, %c0_i32, %c0_i32_0 : i32, i32, i32
  }
  func.func @transform_2(%arg0: i32, %arg1: i32) -> (i32, i32, i32) {
    %c0_i32 = arith.constant 0 : i32
    %c0_i32_0 = arith.constant 0 : i32
    return %arg0, %c0_i32, %arg1 : i32, i32, i32
  }
  func.func @transform_3(%arg0: i32, %arg1: i32) -> (i32, i32, i32) {
    %c0_i32 = arith.constant 0 : i32
    %c0_i32_0 = arith.constant 0 : i32
    %c0_i32_1 = arith.constant 0 : i32
    return %arg0, %c0_i32, %c0_i32_0 : i32, i32, i32
  }
  func.func @transform_4(%arg0: i32, %arg1: i32) -> (i32, i32) {
    %c0_i32 = arith.constant 0 : i32
    %c0_i32_0 = arith.constant 0 : i32
    %c0_i32_1 = arith.constant 0 : i32
    return %c0_i32, %c0_i32_0 : i32, i32
  }
  func.func @transform_5(%arg0: i32, %arg1: i32) -> (i32, i32) {
    %c0_i32 = arith.constant 0 : i32
    %c0_i32_0 = arith.constant 0 : i32
    %c0_i32_1 = arith.constant 0 : i32
    return %c0_i32, %c0_i32_0 : i32, i32
  }
  func.func @transform_6(%arg0: i32, %arg1: i32) -> (i32, i32) {
    %c0_i32 = arith.constant 0 : i32
    %c0_i32_0 = arith.constant 0 : i32
    %c0_i32_1 = arith.constant 0 : i32
    return %c0_i32, %c0_i32_0 : i32, i32
  }
  func.func @transform_7(%arg0: i32, %arg1: i32) -> (i32, i32) {
    %c0_i32 = arith.constant 0 : i32
    %c0_i32_0 = arith.constant 0 : i32
    %c0_i32_1 = arith.constant 0 : i32
    return %c0_i32, %c0_i32_0 : i32, i32
  }
  func.func @transform_8(%arg0: i32, %arg1: i32) -> (i32, i32) {
    %c0_i32 = arith.constant 0 : i32
    %c0_i32_0 = arith.constant 0 : i32
    %c0_i32_1 = arith.constant 0 : i32
    return %c0_i32, %c0_i32_0 : i32, i32
  }
  func.func @transform_9(%arg0: i32, %arg1: i32) -> (i32, i32, i32) {
    %c0_i32 = arith.constant 0 : i32
    %c0_i32_0 = arith.constant 0 : i32
    return %arg0, %c0_i32, %arg1 : i32, i32, i32
  }
}

</mosaic_0001>

<bundles_post_ra>
// kernel: tpu_custom_call.1
= control target key start
LH: loop header
LB: loop body
LE: loop exit
PB: predicated region body
PF: predicated region fallthrough
CT: control target
= control target key end

     0   :  { %14 = vsyncpa [#allocation3], 0  ;;  %s1698_s0 = inlined_call_operand.vmem [shape: f32[2,3,32], index: 0, kind: input, shape index: {}]   ;;  %s1699_s1 = inlined_call_operand.vmem [shape: f32[2,16,3], index: 1, kind: input, shape index: {}]   ;;  %s1700_s2 = inlined_call_operand.vmem [shape: f32[2,3,32], index: 2, kind: input, shape index: {}]   ;;  %s1701_s3 = inlined_call_operand.vmem [shape: f32[2,8,16], index: 3, kind: input, shape index: {}]   ;;  %s1702_s4 = inlined_call_operand.vmem [shape: f32[32,3], index: 4, kind: input, shape index: {}]   ;;  %s1703_s5 = inlined_call_operand.vmem [shape: f32[32,8], index: 5, kind: input, shape index: {}]   ;;  %s1704_s6 = inlined_call_operand.vmem [shape: f32[32,1], index: 6, kind: input, shape index: {}]   ;;  %s1705_s7 = inlined_call_operand.vmem [shape: f32[16,32], index: 7, kind: input, shape index: {}]   ;;  %s1706_s8 = inlined_call_operand.vmem [shape: f32[16,1], index: 8, kind: input, shape index: {}]   ;;  %s1707_s9 = inlined_call_operand.hbm [shape: f32[2,16,32], index: 9, kind: output, shape index: {}]  }
   0x1   :  { %16 = vsyncpa [#allocation3 + $0x1], 0  ;;  %s1461_s30 = smov 0   ;;  %s1463_s10 = smov 0  }
   0x2   :  { %s1465_s11 = smov 0   ;;  %s1467_s12 = smov 0  }
   0x3   :  { %s1469_s13 = smov 0   ;;  %s1471_s14 = smov 0  }
   0x4 LB: > { %s1147_s15 = sadd.s32 4294967295, %s1400_s14   ;;  %s1148_s16 = sadd.s32 4294967294, %s1400_s14   ;;  %s1400_s14 = sphi %s1471_s14, %s22_s14   ;;  %s1396_s13 = sphi %s1469_s13, %s1716_s13   ;;  %s1392_s12 = sphi %s1467_s12, %s1715_s12   ;;  %s1388_s11 = sphi %s1465_s11, %s1714_s11   ;;  %s1384_s10 = sphi %s1463_s10, %s1713_s10   ;;  %s1380_s30 = sphi %s1461_s30, %s1712_s30  }
   0x5   : > { %s34_s17 = sadd.s32 1, %s1396_s13  ;;  %s256_s18 = sadd.s32 1, %s1388_s11 }
   0x6   : > { %p36_p0 = scmp.ge.s32.totalorder %s34_s17, 2  ;;  %p266_p1 = scmp.ne.s32.totalorder %s1388_s11, %s1384_s10 }
   0x7   : > { %p267_p2 = scmp.eq.s32.totalorder %s1147_s15, 1  ;;  %p272_p3 = scmp.ne.s32.totalorder %s1384_s10, %s1380_s30 }
   0x8   : > { %s1718_s17 = smov (%p36_p0, %s34_s17), 0  ;;  %p273_p5 = scmp.eq.s32.totalorder %s1148_s16, 1 }
   0x9   : > { %p1501_p4 = por %p267_p2, %p266_p1  ;;  %s251_s20 = ssub.s32 %s1396_s13, %s1718_s17 }
   0xa   : > { %p1151_p6 = scmp.ge.s32.totalorder %s1400_s14, 1  ;;  %p254_p7 = scmp.eq.s32.totalorder %s251_s20, 0 }
   0xb   : > { %p1508_p8 = por %p273_p5, %p272_p3  ;;  %p341_p9 = scmp.lt.s32.totalorder %s1400_s14, 3 }
   0xc   : > { %s1514_s22 = scalar_select %p254_p7, %s1388_s11, %s256_s18  }
   0xd   : > { %p342_p10 = pnand %p1151_p6, %p341_p9 }
   0xe   : > { %p395_p11 = scmp.lt.s32.totalorder (!%p342_p10), %s1392_s12, 1  ;;  %v1402_v0 = vmov (!%p342_p10), 1   ;;  %v1403_v1 = vmov (!%p342_p10), 0   ;;  %v1404_v4 = vmov (!%p342_p10), 2   ;;  %v1405_v5 = vmov (!%p342_p10), 0.0|0.0   ;;  %s1408_s29 = smov (!%p342_p10), [#allocation2]  }
   0xf   : > { %345 = sbr.rel (%p342_p10) target bundleno = 988 (0x3dc), region = 56  ;;  %1309 = vset.pattern.permute.xlu1 (!%p342_p10), %v1402_v0  ;;  %1308 = vset.pattern.permute.xlu0 (!%p342_p10), %v1403_v1  ;;  %v432_v6 = vlaneseq (!%p342_p10)  ;;  %vm481_vm0 = vcmask (!%p342_p10), 261120   ;;  %vm1406_vm1 = vmmov (!%p342_p10), 0   ;;  %v1407_v43 = vmov (!%p342_p10), 0.0   ;;  %s1326_s15 = sshll.u32 (!%p342_p10), %s1408_s29, 4  ;;  %s1327_s15 = int_to_ptr.vmem [resolvable:$false] %s1326_s15 }
  0x10   : > { %1230 = vmatprep.subr.bf16.mxu0 (!%p342_p10), %v1405_v5  ;;  %1200 = vmatprep.mubr.msk.f32.mxu0 (!%p342_p10), %vm1406_vm1, %v1407_v43 }
  0x11   : > { %v1525_v7 = vshrl.u32 (!%p342_p10), %v432_v6, 7 }
  0x13   : > { %v452_v8 = vsub.s32 (!%p342_p10), 1, %v1525_v7  ;;  %v434_v9 = vsub.s32 (!%p342_p10), 0, %v1525_v7  ;;  %v470_v15 = vsub.s32 (!%p342_p10), 2, %v1525_v7  ;;  %v1538_v46 = vadd.s32 (!%p342_p10), 8, %v1525_v7 }
  0x16   : > { %s1518_s23 = scalar_select %p395_p11, %s1392_s12, 1 }
  0x18   : > { %s1175_s24 = sshll.u32 %s1518_s23, 4  ;;  %s1708_s28 = sshll.u32 %s1518_s23, 2 }
  0x19   : > { %s406_s27 = scalar_lea.vmem %s1699_s1, %s1175_s24  ;;  %s401_s16 = scalar_lea.vmem %s1698_s0, %s1708_s28 }
  0x1a   : > { %v420_v2 = vld [vmem:[%s406_s27] sm:$0xff]  ;;  %v421_v3 = vld [vmem:[%s406_s27 + $0x8] sm:$0xff]  ;;  %s1157_s18 = sshll.u32 %s1518_s23, 3 }
  0x1b   : > { %443 = vperm.xlu1 %1309, %v420_v2   ;;  %424 = vperm.xlu0 %1308, %v420_v2   ;;  %v419_v10 = vld [vmem:[%s401_s16] sm:$0x7]  ;;  %s417_s25 = scalar_lea.vmem %s1701_s3, %s1157_s18  ;;  %s1711_s16 = sshll.u32 %s1518_s23, 2 }
  0x1c   : > { %v453_v12 = vrot.slane %v419_v10, %v452_v8  ;;  %v435_v14 = vrot.slane %v419_v10, %v434_v9  ;;  %v471_v22 = vrot.slane %v419_v10, %v470_v15  ;;  %s413_s24 = scalar_lea.vmem %s1700_s2, %s1711_s16  ;;  %s392_s16 = sand.u32 1, %s1384_s10  }
  0x1d   : > { %s1152_s18 = sshll.u32 %s392_s16, 4 }
  0x1e   : > { %s394_s20 = scalar_lea.vmem [#allocation2], %s1152_s18  ;;  %s1328_s18 = scalar_lea.vmem %s1327_s15, 512 }
  0x1f   : > { %447 = vperm.xlu1 %1309, %v421_v3   ;;  %429 = vperm.xlu0 %1308, %v421_v3  }
  0x23   : > { %1311 = vset.pattern.permute.xlu1 %v1404_v4  ;;  %1310 = vset.pattern.permute.xlu0 %v1404_v4 }
  0x24   : > { %465 = vperm.xlu1 %1311, %v421_v3   ;;  %461 = vperm.xlu0 %1310, %v420_v2  }
  0x28   : > { %1312 = vset.pattern.permute.xlu1 %v1403_v1  ;;  %1313 = vset.pattern.permute.xlu0 %v1403_v1 }
  0x9a   : > { %v444_v11 = vpop.permute.xlu1 %443  ;;  %v425_v13 = vpop.permute.xlu0 %424 }
  0x9b   : > { %v454_v16 = vsub.f32 %v444_v11, %v453_v12  ;;  %v436_v17 = vsub.f32 %v425_v13, %v435_v14 }
  0x9d   : > { %v456_v23 = vmul.f32 %v454_v16, %v454_v16  ;;  %v438_v24 = vmul.f32 %v436_v17, %v436_v17 }
  0x9e   : > { %v448_v18 = vpop.permute.xlu1 %447  ;;  %v430_v19 = vpop.permute.xlu0 %429 }
  0x9f   : > { %v455_v20 = vsub.f32 %v448_v18, %v453_v12  ;;  %v437_v21 = vsub.f32 %v430_v19, %v435_v14  ;;  %v458_v31 = vadd.f32 %v456_v23, %v438_v24 }
  0xa1   : > { %v457_v25 = vmul.f32 %v455_v20, %v455_v20  ;;  %v439_v26 = vmul.f32 %v437_v21, %v437_v21 }
  0xa3   : > { %v466_v27 = vpop.permute.xlu1 %465  ;;  %v462_v28 = vpop.permute.xlu0 %461  ;;  %v459_v32 = vadd.f32 %v457_v25, %v439_v26 }
  0xa4   : > { %v473_v29 = vsub.f32 %v466_v27, %v471_v22  ;;  %v472_v30 = vsub.f32 %v462_v28, %v471_v22 }
  0xa6   : > { %v475_v33 = vmul.f32 %v473_v29, %v473_v29  ;;  %v474_v34 = vmul.f32 %v472_v30, %v472_v30 }
  0xa8   : > { %v477_v35 = vadd.f32 %v475_v33, %v459_v32  ;;  %v476_v36 = vadd.f32 %v474_v34, %v458_v31 }
  0xaa   : > { %v483_v37 = vsel %vm481_vm0, %v477_v35, inf  ;;  %v482_v38 = vsel %vm481_vm0, %v476_v36, inf }
  0xab   : > { %v484_v39 = vmin.f32 %v482_v38, %v483_v37 }
  0xad   : > { %v485_v40 = vrot.slane %v484_v39, 4 }
  0xaf   : > { %v486_v41 = vmin.f32 %v484_v39, %v485_v40 }
  0xb1   : > { %v487_v42 = vrot.slane %v486_v41, 2 }
  0xb3   : > { %v488_v44 = vmin.f32 %v486_v41, %v487_v42 }
  0xb5   : > { %v489_v45 = vrot.slane %v488_v44, 1 }
  0xb7   : > { %v490_v47 = vmin.f32 %v488_v44, %v489_v45 }
  0xb9   : > { %vm491_vm2 = vcmp.eq.f32.partialorder %v476_v36, %v490_v47  ;;  %vm492_vm3 = vcmp.eq.f32.partialorder %v477_v35, %v490_v47  ;;  %v510_v52 = vadd.f32 1e-08, %v490_v47 }
  0xba   : > { %v493_v48 = vsel %vm491_vm2, %v1525_v7, 16  ;;  %v494_v49 = vsel %vm492_vm3, %v1538_v46, 16 }
  0xbb   : > { %v495_v50 = vsel %vm481_vm0, %v493_v48, 2147483647  ;;  %v496_v51 = vsel %vm481_vm0, %v494_v49, 2147483647  ;;  %1314 = vrcp.f32 %v510_v52 }
  0xbc   : > { %vm497_vm4 = vcmp.lt.s32.totalorder %v495_v50, %v496_v51 }
  0xbd   : > { %v498_v53 = vsel %vm497_vm4, %v495_v50, %v496_v51 }
  0xbe   : > { %v499_v54 = vrot.slane %v498_v53, 4 }
  0xc0   : > { %vm500_vm5 = vcmp.lt.s32.totalorder %v498_v53, %v499_v54 }
  0xc1   : > { %v501_v55 = vsel %vm500_vm5, %v498_v53, %v499_v54 }
  0xc2   : > { %v502_v56 = vrot.slane %v501_v55, 2 }
  0xc4   : > { %vm503_vm6 = vcmp.lt.s32.totalorder %v501_v55, %v502_v56 }
  0xc5   : > { %v504_v57 = vsel %vm503_vm6, %v501_v55, %v502_v56  ;;  %v1315_v60 = vpop.eup %1314 }
  0xc6   : > { %v505_v58 = vrot.slane %v504_v57, 1 }
  0xc8   : > { %vm506_vm7 = vcmp.lt.s32.totalorder %v504_v57, %v505_v58 }
  0xc9   : > { %v507_v59 = vsel %vm506_vm7, %v504_v57, %v505_v58 }
  0xca   : > { %vm508_vm8 = vcmp.eq.s32.totalorder %v1525_v7, %v507_v59  ;;  %vm509_vm9 = vcmp.eq.s32.totalorder %v1538_v46, %v507_v59 }
  0xcb   : > { %v517_v61 = vsel %vm508_vm8, inf, %v476_v36  ;;  %v1546_v62 = vsel %vm508_vm8, %v1315_v60, 0.0  ;;  %v1548_v63 = vsel %vm509_vm9, %v1315_v60, 0.0  ;;  %v518_v0 = vsel %vm509_vm9, inf, %v477_v35 }
  0xcc   : > { %v519_v1 = vsel %vm481_vm0, %v517_v61, inf  ;;  %v520_v2 = vsel %vm481_vm0, %v518_v0, inf }
  0xcd   : > { %v521_v3 = vmin.f32 %v519_v1, %v520_v2 }
  0xcf   : > { %v522_v4 = vrot.slane %v521_v3, 4 }
  0xd1   : > { %v523_v5 = vmin.f32 %v521_v3, %v522_v4  ;;  %v418_v4 = vld [vmem:[%s417_s25] sm:$0xff]  ;;  %s1176_s25 = sshll.u32 %s1392_s12, 8  ;;  %s1652_s12 = scalar_lea.sflag [#allocation3], %s392_s16 }
  0xd2   : > { %s1648_s27 = scalar_lea.hbm %s1707_s9, %s1176_s25 }
  0xd3   : > { %v524_v6 = vrot.slane %v523_v5, 2 }
  0xd5   : > { %v525_v8 = vmin.f32 %v523_v5, %v524_v6  ;;  %v683_v5 = vld [vmem:[%s1703_s5] sm:$0xff] }
  0xd6   : > { %v687_v6 = vld [vmem:[%s1704_s6] sm:$0xff] }
  0xd7   : > { %v526_v9 = vrot.slane %v525_v8, 1  ;;  %893 = vperm.xlu1 %1312, %v687_v6  }
  0xd9   : > { %v527_v10 = vmin.f32 %v525_v8, %v526_v9  ;;  %v688_v8 = vld [vmem:[%s1704_s6 + $0x8] sm:$0xff]  ;;  %v689_v9 = vld [vmem:[%s1704_s6 + $0x10] sm:$0xff] }
  0xda   : > { %898 = vperm.xlu0 %1313, %v688_v8  }
  0xdb   : > { %vm528_vm10 = vcmp.eq.f32.partialorder %v517_v61, %v527_v10  ;;  %vm529_vm11 = vcmp.eq.f32.partialorder %v518_v0, %v527_v10  ;;  %v547_v33 = vadd.f32 1e-08, %v527_v10  ;;  %v921_v10 = vld [vmem:[%s1706_s8] sm:$0xff]  ;;  %903 = vperm.xlu1 %1312, %v689_v9  }
  0xdc   : > { %v530_v11 = vsel %vm528_vm10, %v1525_v7, 16  ;;  %v531_v12 = vsel %vm529_vm11, %v1538_v46, 16  ;;  %vm604_vm11 = vcmask 130048  }
  0xdd   : > { %v532_v13 = vsel %vm481_vm0, %v530_v11, 2147483647  ;;  %v533_v14 = vsel %vm481_vm0, %v531_v12, 2147483647  ;;  %1316 = vrcp.f32 %v547_v33  ;;  %v690_v11 = vld [vmem:[%s1704_s6 + $0x18] sm:$0xff]  ;;  %v922_v12 = vld [vmem:[%s1706_s8 + $0x8] sm:$0xff] }
  0xde   : > { %vm534_vm12 = vcmp.lt.s32.totalorder %v532_v13, %v533_v14  ;;  %925 = vperm.xlu0 %1313, %v921_v10  }
  0xdf   : > { %v535_v15 = vsel %vm534_vm12, %v532_v13, %v533_v14  ;;  %vm691_vm12 = vcmask 64512   ;;  %908 = vperm.xlu1 %1312, %v690_v11   ;;  %v684_v14 = vld [vmem:[%s1703_s5 + $0x8] sm:$0xff] }
  0xe0   : > { %v536_v16 = vrot.slane %v535_v15, 4  ;;  %1205 = vmatprep.mubr.msk.f32.mxu1 %vm691_vm12, %v683_v5 }
  0xe2   : > { %vm537_vm13 = vcmp.lt.s32.totalorder %v535_v15, %v536_v16 }
  0xe3   : > { %v538_v17 = vsel %vm537_vm13, %v535_v15, %v536_v16  ;;  %930 = vperm.xlu1 %1312, %v922_v12   ;;  %v678_v15 = vld [vmem:[%s413_s24] sm:$0x7]  ;;  %vm802_vm13 = vcmask 1042432   ;;  %s1033_s24 = sshll.u32 %s394_s20, 4  ;;  %s1643_s24 = int_to_ptr.vmem [resolvable:$true] %s1033_s24 }
  0xe4   : > { %v539_v18 = vrot.slane %v538_v17, 2  ;;  %s1322_s23 = scalar_lea.vmem %s1643_s24, 256  ;;  %p1329_p1 = scmp.lt.s32.totalorder %s1643_s24, %s1327_s15 }
  0xe5   : > { %p1323_p12 = scmp.ne.s32.totalorder %s1643_s24, %s1322_s23  ;;  %p1330_p2 = scmp.lt.s32.totalorder %s1328_s18, %s1322_s23 }
  0xe6   : > { %vm540_vm14 = vcmp.lt.s32.totalorder %v538_v17, %v539_v18 }
  0xe7   : > { %v541_v19 = vsel %vm540_vm14, %v538_v17, %v539_v18  ;;  %v1317_v44 = vpop.eup %1316  ;;  %v685_v17 = vld [vmem:[%s1703_s5 + $0x10] sm:$0xff]  ;;  %v686_v18 = vld [vmem:[%s1703_s5 + $0x18] sm:$0xff]  ;;  %vm789_vm14 = vcmask 23552   ;;  %p1324_p13 = pnand %p1323_p12, %p1501_p4  ;;  %p1331_p3 = por %p1330_p2, %p1329_p1 }
  0xe8   : > { %v542_v20 = vrot.slane %v541_v19, 1 }
  0xe9   : > { %p1325_p0 = pneg %p1324_p13 }
  0xea   : > { %vm543_vm15 = vcmp.lt.s32.totalorder %v541_v19, %v542_v20 }
  0xeb   : > { %v544_v21 = vsel %vm543_vm15, %v541_v19, %v542_v20  ;;  %v679_v19 = vld [vmem:[%s1702_s4] sm:$0xff]  ;;  %v680_v20 = vld [vmem:[%s1702_s4 + $0x8] sm:$0xff]  ;;  %p1332_p5 = pnand %p1331_p3, %p1325_p0 }
  0xec   : > { %vm545_vm1 = vcmp.eq.s32.totalorder %v1525_v7, %v544_v21  ;;  %vm546_vm2 = vcmp.eq.s32.totalorder %v1538_v46, %v544_v21  ;;  %v681_v21 = vld [vmem:[%s1702_s4 + $0x10] sm:$0xff] }
  0xed   : > { %v554_v22 = vsel %vm545_vm1, inf, %v517_v61  ;;  %v555_v23 = vsel %vm546_vm2, inf, %v518_v0  ;;  %v550_v47 = vsel %vm545_vm1, %v1317_v44, 0.0  ;;  %v551_v48 = vsel %vm546_vm2, %v1317_v44, 0.0 }
  0xee   : > { %v556_v24 = vsel %vm481_vm0, %v554_v22, inf  ;;  %v557_v25 = vsel %vm481_vm0, %v555_v23, inf  ;;  %v552_v51 = vadd.f32 %v550_v47, %v1546_v62  ;;  %v553_v52 = vadd.f32 %v551_v48, %v1548_v63 }
  0xef   : > { %v558_v26 = vmin.f32 %v556_v24, %v557_v25 }
  0xf1   : > { %v559_v27 = vrot.slane %v558_v26, 4 }
  0xf3   : > { %v560_v28 = vmin.f32 %v558_v26, %v559_v27 }
  0xf5   : > { %v561_v29 = vrot.slane %v560_v28, 2 }
  0xf7   : > { %v562_v30 = vmin.f32 %v560_v28, %v561_v29 }
  0xf9   : > { %v563_v31 = vrot.slane %v562_v30, 1 }
  0xfb   : > { %v564_v32 = vmin.f32 %v562_v30, %v563_v31 }
  0xfd   : > { %vm565_vm3 = vcmp.eq.f32.partialorder %v554_v22, %v564_v32  ;;  %vm566_vm4 = vcmp.eq.f32.partialorder %v555_v23, %v564_v32  ;;  %v584_v38 = vadd.f32 1e-08, %v564_v32  ;;  %v682_v22 = vld [vmem:[%s1702_s4 + $0x18] sm:$0xff]  ;;  %v919_v23 = vld [vmem:[%s1705_s7] sm:$0xff] }
  0xfe   : > { %v567_v34 = vsel %vm565_vm3, %v1525_v7, 16  ;;  %v568_v35 = vsel %vm566_vm4, %v1538_v46, 16 }
  0xff   : > { %v569_v36 = vsel %vm481_vm0, %v567_v34, 2147483647  ;;  %v570_v37 = vsel %vm481_vm0, %v568_v35, 2147483647  ;;  %1318 = vrcp.f32 %v584_v38 }
 0x100   : > { %vm571_vm5 = vcmp.lt.s32.totalorder %v569_v36, %v570_v37 }
 0x101   : > { %v572_v39 = vsel %vm571_vm5, %v569_v36, %v570_v37 }
 0x102   : > { %v573_v40 = vrot.slane %v572_v39, 4 }
 0x104   : > { %vm574_vm6 = vcmp.lt.s32.totalorder %v572_v39, %v573_v40 }
 0x105   : > { %v575_v41 = vsel %vm574_vm6, %v572_v39, %v573_v40 }
 0x106   : > { %v576_v42 = vrot.slane %v575_v41, 2 }
 0x108   : > { %vm577_vm7 = vcmp.lt.s32.totalorder %v575_v41, %v576_v42 }
 0x109   : > { %v578_v43 = vsel %vm577_vm7, %v575_v41, %v576_v42  ;;  %v1319_v50 = vpop.eup %1318  ;;  %v920_v42 = vld [vmem:[%s1705_s7 + $0x8] sm:$0xff] }
 0x10a   : > { %v579_v45 = vrot.slane %v578_v43, 1 }
 0x10c   : > { %vm580_vm8 = vcmp.lt.s32.totalorder %v578_v43, %v579_v45 }
 0x10d   : > { %v581_v49 = vsel %vm580_vm8, %v578_v43, %v579_v45 }
 0x10e   : > { %vm582_vm9 = vcmp.eq.s32.totalorder %v1525_v7, %v581_v49  ;;  %vm583_vm10 = vcmp.eq.s32.totalorder %v1538_v46, %v581_v49 }
 0x10f   : > { %v587_v53 = vsel %vm582_vm9, %v1319_v50, 0.0  ;;  %v588_v54 = vsel %vm583_vm10, %v1319_v50, 0.0 }
 0x110   : > { %v589_v55 = vadd.f32 %v587_v53, %v552_v51  ;;  %v590_v56 = vadd.f32 %v588_v54, %v553_v52 }
 0x112   : > { %v591_v57 = vsel %vm481_vm0, %v589_v55, 0.0  ;;  %v592_v58 = vsel %vm481_vm0, %v590_v56, 0.0 }
 0x113   : > { %v593_v59 = vadd.f32 %v592_v58, %v591_v57 }
 0x115   : > { %v594_v60 = vrot.slane %v593_v59, 4 }
 0x117   : > { %v595_v61 = vadd.f32 %v594_v60, %v593_v59 }
 0x119   : > { %v596_v0 = vrot.slane %v595_v61, 2 }
 0x11b   : > { %v597_v62 = vadd.f32 %v596_v0, %v595_v61 }
 0x11d   : > { %v598_v1 = vrot.slane %v597_v62, 1 }
 0x11f   : > { %v599_v63 = vadd.f32 %v598_v1, %v597_v62 }
 0x121   : > { %1320 = vrcp.f32 %v599_v63 }
 0x12b   : > { %v1321_v7 = vpop.eup %1320 }
 0x12c   : > { %v602_v2 = vmul.f32 %v1321_v7, %v589_v55  ;;  %v603_v46 = vmul.f32 %v1321_v7, %v590_v56 }
 0x12e   : > { %v1231_v3 = vpack.c.bf16 %v603_v46, %v602_v2 }
 0x130   : > { %1232 = vmatpush3.bf16.msra.mxu0 %v1231_v3 }
 0x133   : > { %1201 = vmatmul.mubr.msk.f32.vlgmr.msra.gmra.mrb[0].mxu0 %vm604_vm11, %v418_v4 }
 0x134   : > { %1227 = vmatprep.mubr.msk.f32.mxu0 %vm481_vm0, %v919_v23 }
 0x156   : > { %v894_v24 = vpop.permute.xlu1 %893 }
 0x159   : > { %v899_v26 = vpop.permute.xlu0 %898 }
 0x15a   : > { %v904_v25 = vpop.permute.xlu1 %903 }
 0x15d   : > { %v926_v45 = vpop.permute.xlu0 %925 }
 0x15e   : > { %v909_v32 = vpop.permute.xlu1 %908 }
 0x162   : > { %v931_v43 = vpop.permute.xlu1 %930 }
 0x206   : > { %v674_v13 = vpop.f32.mrb[0].mxu0 }
 0x207   : > { %v1202_v16 = vpop.f32.mrb[1].mxu0  ;;  %1203 = vmatprep.subr.mxu1 %v674_v13 }
 0x208   : > { %1204 = vmatpush3.msra.mxu1 %v674_v13 }
 0x209   : > { %1206 = vmatmul.mubr.msk.f32.vlgmr.msra.gmra.mrb[0].mxu1 %vm691_vm12, %v684_v14  ;;  %1211 = vmatprep.subr.msk.mxu1 %vm802_vm13, %v678_v15 }
 0x20a   : > { %1212 = vmatpush3.msk.msra.mxu1 %vm802_vm13, %v678_v15  ;;  %1208 = vmatprep.mubr.msk.f32.mxu1 %vm691_vm12, %v685_v17 }
 0x20d   : > { %1209 = vmatmul.mubr.msk.f32.gmra.mrb[2].mxu1 %vm691_vm12, %v686_v18 }
 0x20e   : > { %1213 = vmatprep.mubr.msk.f32.mxu1 %vm789_vm14, %v679_v19 }
 0x211   : > { %1214 = vmatmul.mubr.msk.f32.vlgmr.msra.gmra.mrb[0].mxu1 %vm789_vm14, %v680_v20 }
 0x212   : > { %1216 = vmatprep.mubr.msk.f32.mxu1 %vm789_vm14, %v681_v21 }
 0x215   : > { %1217 = vmatmul.mubr.msk.f32.gmra.mrb[2].mxu1 %vm789_vm14, %v682_v22 }
 0x2e4   : > { %v1215_v27 = vpop.f32.mrb[0].mxu1 }
 0x2e5   : > { %v912_v28 = vadd.f32 %v1215_v27, %v899_v26  ;;  %v872_v29 = vpop.f32.mrb[1].mxu1 }
 0x2e6   : > { %v911_v30 = vadd.f32 %v894_v24, %v872_v29 }
 0x2e7   : > { %v916_v31 = vmax.f32 %v912_v28, 0.0 }
 0x2e8   : > { %v915_v33 = vmax.f32 %v911_v30, 0.0  ;;  %v1218_v34 = vpop.f32.mrb[2].mxu1 }
 0x2e9   : > { %v914_v35 = vadd.f32 %v1218_v34, %v909_v32  ;;  %v882_v36 = vpop.f32.mrb[3].mxu1 }
 0x2ea   : > { %v1233_v37 = vpack.c.bf16 %v916_v31, %v915_v33  ;;  %v913_v38 = vadd.f32 %v904_v25, %v882_v36 }
 0x2eb   : > { %v918_v39 = vmax.f32 %v914_v35, 0.0 }
 0x2ec   : > { %v917_v40 = vmax.f32 %v913_v38, 0.0  ;;  %1234 = vmatprep.subr.bf16.mxu0 %v1233_v37 }
 0x2ed   : > { %1236 = vmatpush3.bf16.msra.mxu0 %v1233_v37 }
 0x2ee   : > { %v1237_v41 = vpack.c.bf16 %v918_v39, %v917_v40 }
 0x2f0   : > { %1238 = vmatprep.subr.bf16.mxu0 %v1237_v41 }
 0x2f1   : > { %1240 = vmatpush3.bf16.msra.mxu0 %v1237_v41 }
 0x2f4   : > { %1228 = vmatmul.mubr.msk.f32.vlgmr.msra.gmra.mrb[2].mxu0 %vm481_vm0, %v920_v42 }
 0x3c7   : > { %v1229_v44 = vpop.f32.mrb[2].mxu0 }
 0x3c8   : > { %v1011_v47 = vadd.f32 %v1229_v44, %v931_v43  ;;  %v1005_v48 = vpop.f32.mrb[3].mxu0 }
 0x3c9   : > { %v1006_v49 = vadd.f32 %v1005_v48, %v926_v45 }
 0x3ca   : > { %v1015_v50 = vmax.f32 %v1011_v47, 0.0 }
 0x3cb   : > { %v1014_v51 = vmax.f32 %v1006_v49, 0.0 }
 0x3cc   : > { %1017 = vst.msk [vmem:[%s394_s20 + $0x8] sm:$0xff] %vm481_vm0, %v1015_v50 }
 0x3cd   : > { %1016 = vst.msk [vmem:[%s394_s20] sm:$0xff] %vm481_vm0, %v1014_v51 }
 0x3ce   : > { %1335 = shalt.err (!%p1332_p5)
}
 0x3cf   : > { %s1336_s16 = scalar_lea.hbm %s1648_s27, 256  ;;  %s1340_s26 = scalar_lea.hbm %s1707_s9, 512 }
 0x3d0   : > { %p1337_p6 = scmp.ne.s32.totalorder %s1648_s27, %s1336_s16  ;;  %p1341_p10 = scmp.lt.u32.totalorder %s1648_s27, %s1707_s9 }
 0x3d1   : > { %p1342_p11 = scmp.lt.u32.totalorder %s1340_s26, %s1336_s16  ;;  %p1344_p13 = scmp.lt.u32.totalorder %s1336_s16, %s1648_s27 }
 0x3d2   : > { %p1338_p7 = pnand %p1337_p6, %p1501_p4 }
 0x3d3   : > { %p1343_p12 = por %p1342_p11, %p1341_p10 }
 0x3d4   : > { %p1339_p9 = pneg %p1338_p7 }
 0x3d5   : > { %p1345_p0 = por %p1344_p13, %p1343_p12 }
 0x3d7   : > { %p1346_p1 = pnand %p1345_p0, %p1339_p9 }
 0x3d9   : > { %1349 = shalt.err (!%p1346_p1)
}
 0x3da   : > { %s1409_s23 = smov 128   ;;  %s1410_s15 = smov 8  }
 0x3db   : > { %1245 = dma.vmem_to_hbm [thread:$0]  (%p1501_p4), %s1643_s24, 256, %s1648_s27, %s1652_s12, %s1409_s23, %s1409_s23, %s1410_s15  }
 0x3dc PF: > { %p1251_p2 = scmp.ge.s32.totalorder %s1400_s14, 2  ;;  %s1048_s18 = sand.u32 1, %s1380_s30  }
 0x3dd   : > { %s1049_s16 = scalar_lea.sflag [#allocation3], %s1048_s18 }
 0x3de   : > { %p1248_p3 = pnand %p1251_p2, %p1508_p8 }
 0x3e0   : > { %1375 = dma.done.wait (!%p1248_p3), %s1049_s16, 256  }
 0x3e1   : > { %1377 = vsyncadd (!%p1248_p3), %s1049_s16, 4294967040  ;;  %s22_s14 = sadd.s32 1, %s1400_s14   ;;  %s1712_s30 = smov %s1384_s10 }
 0x3e2   : > { %p19_p5 = scmp.ge.s32.totalorder %s22_s14, 4   ;;  %s1713_s10 = smov %s1388_s11 }
 0x3e3   : > { %s1714_s11 = smov %s1514_s22  ;;  %s1715_s12 = smov %s1396_s13 }
 0x3e4   : > { %s1716_s13 = smov %s1718_s17  ;;  %21 = sbr.rel (!%p19_p5) target bundleno = 4 (0x4), region = 100 }
 0x3eb   :  { %1054 = vsyncpa [#allocation3], 1 }
 0x3ec   :  { %1056 = vsyncpa [#allocation3 + $0x1], 1 }

</bundles_post_ra>
